<compile_context>
chip_gen: v6e
topology: v6e:2x2x1
jax: 0.10.0
libtpu: 0.0.40
codegen_flags: <defaults>
</compile_context>

<pallas_src>
import functools

import jax
import jax.numpy as jnp
from jax import lax
from jax.experimental import pallas as pl
from jax.experimental.pallas import tpu as pltpu


def _h_swish(y):
    return y * jnp.clip(y + 3.0, 0.0, 6.0) * (1.0 / 6.0)


def coord_att_kernel(x_ref, w1t_ref, b1_ref, w23t_ref, b23_ref,
                     o_ref, ah_ref, aw_ref, *, h_chunk, n_chunks, unroll):
    # x_ref block: (1, H, W, C) -- C on lanes, W on sublanes, H outer.
    H = x_ref.shape[1]
    W = x_ref.shape[2]
    C = x_ref.shape[3]

    # ---- Phase 1: fused pooling -- one chunked scan computes both pools ----
    # ah_ref temporarily holds per-row sums (pool over W); aw_ref accumulates
    # per-column sums (pool over H).  Scratch persists across grid steps, so
    # the accumulator is zeroed every step.
    aw_ref[...] = jnp.zeros_like(aw_ref)

    def pool_chunk(i, carry):
        hs = pl.multiple_of(i * h_chunk, h_chunk)
        xc = x_ref[0, pl.ds(hs, h_chunk), :, :].astype(jnp.float32)  # (hc,W,C)
        ah_ref[pl.ds(hs, h_chunk), :] = jnp.sum(xc, axis=1)   # sublane reduce
        aw_ref[...] += jnp.sum(xc, axis=0)                    # outer-axis adds
        return carry

    lax.fori_loop(0, n_chunks, pool_chunk, 0, unroll=unroll)

    xh = ah_ref[...] / W                                   # (H, C) mean over W
    xw = aw_ref[...] / H                                   # (W, C) mean over H

    # ---- Phase 2: channel mixing (two MXU dots total) ----
    # conv1 has eval-mode BN folded into w1t/b1 by the wrapper; conv2 and
    # conv3 are merged into one (MIP, 2C) dot.
    pooled = jnp.concatenate([xh, xw], axis=0)             # (H+W, C)
    y = jnp.dot(pooled, w1t_ref[...],
                preferred_element_type=jnp.float32) + b1_ref[...]   # (H+W, MIP)
    y = _h_swish(y)
    a = jax.nn.sigmoid(
        jnp.dot(y, w23t_ref[...], preferred_element_type=jnp.float32)
        + b23_ref[...])                                     # (H+W, 2C)
    ah_ref[...] = a[:H, :C]                                 # (H, C)
    aw_ref[...] = a[H:, C:]                                 # (W, C)

    # ---- Phase 3: chunked apply -- re-read x_ref per H-chunk ----
    # f32 arithmetic, cast only at the store (matches the f32 reference and
    # avoids bf16 pack/unpack on v5e which has no bf16 VALU).
    def apply_chunk(i, carry):
        hs = pl.multiple_of(i * h_chunk, h_chunk)
        xc = x_ref[0, pl.ds(hs, h_chunk), :, :].astype(jnp.float32)  # (hc,W,C)
        ac = ah_ref[pl.ds(hs, h_chunk), :]                           # (hc, C)
        o_ref[0, pl.ds(hs, h_chunk), :, :] = (
            xc * ac[:, None, :] * aw_ref[...][None, :, :]).astype(o_ref.dtype)
        return carry

    lax.fori_loop(0, n_chunks, apply_chunk, 0, unroll=unroll)


def coord_att_nhwc(x_nhwc, w1t, b1, w23t, b23, *, h_chunk=None):
    """Kernel entry point; expects NHWC input and lane-oriented params.

    w1t: (C, MIP) conv1 weight^T with BN folded in.     b1: (1, MIP).
    w23t: (MIP, 2C) = [conv2_w^T | conv3_w^T].          b23: (1, 2C).
    """
    n, h, w, c = x_nhwc.shape
    mip = w1t.shape[1]
    assert w23t.shape == (mip, 2 * c)
    assert b23.shape == (1, 2 * c)

    if h_chunk is None:
        # Scale the chunk with W*C: target ~96 KiB of f32 per chunk so the
        # chunk intermediates stay comfortably in vregs.
        row_bytes = w * c * 4
        target = max(1, (96 * 1024) // row_bytes)
        h_chunk = max(d for d in range(1, h + 1) if h % d == 0 and d <= target)
    assert h % h_chunk == 0
    n_chunks = h // h_chunk
    # Bounded unroll: full unroll only for short loops.
    unroll = n_chunks if n_chunks <= 8 else 4

    kernel = functools.partial(coord_att_kernel, h_chunk=h_chunk,
                               n_chunks=n_chunks, unroll=unroll)

    itemsize = x_nhwc.dtype.itemsize
    block_bytes = h * w * c * itemsize

    def _pad2(rows, cols):          # f32 VMEM padding to (8, 128) tiles
        return (-(-rows // 8) * 8) * (-(-cols // 128) * 128) * 4

    scratch_bytes = _pad2(h, c) + _pad2(w, c)
    param_bytes = 2 * (_pad2(*w1t.shape) + _pad2(*b1.shape)
                       + _pad2(*w23t.shape) + _pad2(*b23.shape))

    # 2x double-buffered input + 2x double-buffered output + params + scratch
    # + headroom, clamped below the physical VMEM of this chip generation
    # (v7x: 64 MiB/TC; v5e/v6e: 128 MiB).
    try:
        info = pltpu.get_tpu_info()
        chip_vmem = int(getattr(info, "vmem_capacity_bytes", 64 << 20))
    except Exception:  # pragma: no cover - conservative fallback
        chip_vmem = 64 << 20
    vmem_ceiling = max(chip_vmem - (8 << 20), 16 << 20)
    need = 4 * block_bytes + scratch_bytes + param_bytes + (6 << 20)
    vmem_limit = int(min(max(need, 16 << 20), vmem_ceiling))
    # TODO(synk): if `need` exceeds `vmem_ceiling` (huge H*W*C on v7x), fall
    # back to an HBM-streaming two-pass variant instead of a full-image block.

    cost = pl.CostEstimate(
        flops=int(n * (2 * h * w * c                      # fused pooling adds
                       + 2 * (h + w) * c * mip            # conv1
                       + 2 * (h + w) * mip * (2 * c)      # merged conv2+conv3
                       + 2 * h * w * c)),                 # elementwise apply
        transcendentals=int(n * (h + w) * 2 * c),         # sigmoids
        bytes_accessed=int(2 * n * block_bytes + param_bytes),
    )

    full2 = lambda i: (0, 0)
    # NOTE(v6e): if profiling shows exposed DMA for N<=2, there is VMEM room
    # for pipeline_mode=pl.Buffered(3) on the x BlockSpec on 128 MiB parts;
    # do NOT apply it on v7x where it costs another full block of 64 MiB.
    return pl.pallas_call(
        kernel,
        out_shape=jax.ShapeDtypeStruct((n, h, w, c), x_nhwc.dtype),
        grid_spec=pltpu.PrefetchScalarGridSpec(
            num_scalar_prefetch=0,
            grid=(n,),
            in_specs=[
                pl.BlockSpec((1, h, w, c), lambda i: (i, 0, 0, 0)),
                pl.BlockSpec((c, mip), full2),       # conv1 weight^T (BN folded)
                pl.BlockSpec((1, mip), full2),       # conv1 bias (BN folded)
                pl.BlockSpec((mip, 2 * c), full2),   # [conv2|conv3] weight^T
                pl.BlockSpec((1, 2 * c), full2),     # [conv2|conv3] bias
            ],
            out_specs=pl.BlockSpec((1, h, w, c), lambda i: (i, 0, 0, 0)),
            scratch_shapes=[
                pltpu.VMEM((h, c), jnp.float32),     # xh sums -> ah
                pltpu.VMEM((w, c), jnp.float32),     # xw sums -> aw
            ],
        ),
        compiler_params=pltpu.CompilerParams(
            dimension_semantics=("parallel",),
            vmem_limit_bytes=vmem_limit),
        cost_estimate=cost,
    )(x_nhwc, w1t, b1, w23t, b23)


def coord_att(x, w1, b1, bn_scale, bn_shift, w2, b2, w3, b3):
    """NCHW interface matching the PyTorch module (eval-mode BN).

    Folds BN into conv1, merges conv2/conv3, transposes params/activations to
    the lane-dense NHWC layout, runs the kernel, transposes back to NCHW.
    Prefer calling coord_att_nhwc directly when the network is NHWC: the two
    transposes here are full HBM read+writes of x around a memory-bound op.
    """
    # Fold eval-mode BatchNorm into conv1.
    w1_eff = bn_scale * w1                        # (MIP, C)
    b1_eff = bn_scale * b1 + bn_shift             # (MIP, 1)
    # Lane-contraction orientation for NHWC matmuls.
    w1t = jnp.transpose(w1_eff)                   # (C, MIP)
    b1t = jnp.transpose(b1_eff)                   # (1, MIP)
    w23t = jnp.concatenate([jnp.transpose(w2), jnp.transpose(w3)], axis=1)  # (MIP, 2C)
    b23t = jnp.concatenate([jnp.transpose(b2), jnp.transpose(b3)], axis=1)  # (1, 2C)

    x_nhwc = jnp.transpose(x, (0, 2, 3, 1))       # layout plumbing only
    out_nhwc = coord_att_nhwc(x_nhwc, w1t, b1t, w23t, b23t)
    return jnp.transpose(out_nhwc, (0, 3, 1, 2))


def coord_att_reference(x, w1, b1, bn_scale, bn_shift, w2, b2, w3, b3):
    """Pure-JAX reference of the PyTorch forward (eval-mode BN), NCHW."""
    xf = x.astype(jnp.float32)
    xh = jnp.mean(xf, axis=3)                                  # (N, C, H)
    xw = jnp.mean(xf, axis=2)                                  # (N, C, W)
    y = jnp.concatenate([xh, xw], axis=2)                      # (N, C, H+W)
    y = jnp.einsum("mc,ncl->nml", w1, y) + b1[None]            # (N, MIP, H+W)
    y = y * bn_scale[None] + bn_shift[None]
    y = _h_swish(y)
    h = x.shape[2]
    yh, yw = y[:, :, :h], y[:, :, h:]
    ah = jax.nn.sigmoid(jnp.einsum("om,nml->nol", w2, yh) + b2[None])  # (N,O,H)
    aw = jax.nn.sigmoid(jnp.einsum("om,nml->nol", w3, yw) + b3[None])  # (N,O,W)
    return (xf * ah[:, :, :, None] * aw[:, :, None, :]).astype(x.dtype)


if __name__ == "__main__":
    def make_params(key, inp, oup, groups):
        mip = inp // groups
        ks = jax.random.split(key, 10)
        conv1_w = jax.random.normal(ks[1], (mip, inp), dtype=jnp.float32) * 0.2
        conv1_b = jax.random.normal(ks[2], (mip, 1), dtype=jnp.float32) * 0.1
        conv2_w = jax.random.normal(ks[3], (oup, mip), dtype=jnp.float32) * 0.2
        conv2_b = jax.random.normal(ks[4], (oup, 1), dtype=jnp.float32) * 0.1
        conv3_w = jax.random.normal(ks[5], (oup, mip), dtype=jnp.float32) * 0.2
        conv3_b = jax.random.normal(ks[6], (oup, 1), dtype=jnp.float32) * 0.1
        bn_gamma = 1.0 + 0.1 * jax.random.normal(ks[7], (mip, 1), jnp.float32)
        bn_beta = 0.1 * jax.random.normal(ks[8], (mip, 1), jnp.float32)
        bn_mean = 0.1 * jax.random.normal(ks[9], (mip, 1), jnp.float32)
        bn_var = jnp.ones((mip, 1), dtype=jnp.float32) * 0.9
        eps = 1e-5
        bn_scale = bn_gamma / jnp.sqrt(bn_var + eps)
        bn_shift = bn_beta - bn_mean * bn_scale
        return (conv1_w, conv1_b, bn_scale, bn_shift,
                conv2_w, conv2_b, conv3_w, conv3_b)

    key = jax.random.PRNGKey(0)
    k_p1, k_p2, k_x1, k_x2 = jax.random.split(key, 4)

    # Test 1: small NCHW f32 shapes consistent with the module.
    N, INP, H, W = 2, 4, 16, 16
    GROUPS = 2
    x = jax.random.normal(k_x1, (N, INP, H, W), dtype=jnp.float32)
    params = make_params(k_p1, INP, INP, GROUPS)
    out = jax.block_until_ready(coord_att(x, *params))
    ref = coord_att_reference(x, *params)
    assert out.shape == (N, INP, H, W)
    assert jnp.allclose(out, ref, atol=1e-5, rtol=1e-5), "f32 mismatch"

    # Test 2: lane-filled C=128 with bf16 activations (groups=32 -> mip=4).
    N2, C2, H2, W2 = 1, 128, 8, 8
    xb = jax.random.normal(k_x2, (N2, C2, H2, W2),
                           dtype=jnp.float32).astype(jnp.bfloat16)
    params2 = make_params(k_p2, C2, C2, 32)
    out2 = jax.block_until_ready(coord_att(xb, *params2))
    ref2 = coord_att_reference(xb, *params2)
    assert out2.shape == (N2, C2, H2, W2)
    assert jnp.allclose(out2.astype(jnp.float32), ref2.astype(jnp.float32),
                        atol=2e-2, rtol=2e-2), "bf16 mismatch"

    print("KERNEL_OK")
</pallas_src>

<mosaic_0001>
module attributes {stable_mosaic.version = 11 : i64} {
  func.func @coord_att_kernel(%arg0: i32, %arg1: memref<1x16x16x4xf32, #tpu.memory_space<vmem>>, %arg2: memref<4x2xf32, #tpu.memory_space<vmem>>, %arg3: memref<1x2xf32, #tpu.memory_space<vmem>>, %arg4: memref<2x8xf32, #tpu.memory_space<vmem>>, %arg5: memref<1x8xf32, #tpu.memory_space<vmem>>, %arg6: memref<1x16x16x4xf32, #tpu.memory_space<vmem>>, %arg7: memref<16x4xf32, #tpu.memory_space<vmem>>, %arg8: memref<16x4xf32, #tpu.memory_space<vmem>>) attributes {dimension_semantics = [#tpu.dimension_semantics<parallel>], iteration_bounds = array<i64: 2>, scalar_prefetch = 0 : i64, scratch_operands = 2 : i64, tpu.core_type = #tpu.core_type<tc>, window_params = [{transform_indices = @transform_0, window_bounds = array<i64: 1, 16, 16, 4>}, {pipeline_mode = #tpu.pipeline_mode<synchronous>, transform_indices = @transform_1, window_bounds = array<i64: 4, 2>}, {pipeline_mode = #tpu.pipeline_mode<synchronous>, transform_indices = @transform_2, window_bounds = array<i64: 1, 2>}, {pipeline_mode = #tpu.pipeline_mode<synchronous>, transform_indices = @transform_3, window_bounds = array<i64: 2, 8>}, {pipeline_mode = #tpu.pipeline_mode<synchronous>, transform_indices = @transform_4, window_bounds = array<i64: 1, 8>}, {transform_indices = @transform_5, window_bounds = array<i64: 1, 16, 16, 4>}]} {
    %cst = arith.constant 0.000000e+00 : f32
    %0 = vector.broadcast %cst : f32 to vector<16x4xf32>
    %c0 = arith.constant 0 : index
    %c0_0 = arith.constant 0 : index
    %1 = vector.load %arg8[%c0, %c0_0] : memref<16x4xf32, #tpu.memory_space<vmem>>, vector<16x4xf32>
    tpu.vector_store %arg8[%c0, %c0_0], %0 {strides = array<i32>} : memref<16x4xf32, #tpu.memory_space<vmem>>, vector<16x4xf32>,
    %c0_i32 = arith.constant 0 : i32
    %c16_i32 = arith.constant 16 : i32
    %2 = arith.muli %c0_i32, %c16_i32 : i32
    %3 = tpu.assume_multiple %2, 16 : i32
    %c0_1 = arith.constant 0 : index
    %4 = arith.index_cast %3 : i32 to index
    %c0_2 = arith.constant 0 : index
    %c0_3 = arith.constant 0 : index
    %5 = vector.load %arg1[%c0_1, %4, %c0_2, %c0_3] : memref<1x16x16x4xf32, #tpu.memory_space<vmem>>, vector<1x16x16x4xf32>
    %6 = vector.shape_cast %5 : vector<1x16x16x4xf32> to vector<16x16x4xf32>
    %cst_4 = arith.constant dense<0.000000e+00> : vector<16x4xf32>
    %7 = vector.multi_reduction <add>, %6, %cst_4 [1] : vector<16x16x4xf32> to vector<16x4xf32>
    %8 = arith.index_cast %3 : i32 to index
    %c0_5 = arith.constant 0 : index
    %9 = vector.load %arg7[%8, %c0_5] : memref<16x4xf32, #tpu.memory_space<vmem>>, vector<16x4xf32>
    tpu.vector_store %arg7[%8, %c0_5], %7 {strides = array<i32>} : memref<16x4xf32, #tpu.memory_space<vmem>>, vector<16x4xf32>,
    %c0_6 = arith.constant 0 : index
    %c0_7 = arith.constant 0 : index
    %10 = vector.load %arg8[%c0_6, %c0_7] : memref<16x4xf32, #tpu.memory_space<vmem>>, vector<16x4xf32>
    %cst_8 = arith.constant dense<0.000000e+00> : vector<16x4xf32>
    %11 = vector.multi_reduction <add>, %6, %cst_8 [0] : vector<16x16x4xf32> to vector<16x4xf32>
    %12 = arith.addf %10, %11 : vector<16x4xf32>
    %c0_9 = arith.constant 0 : index
    %c0_10 = arith.constant 0 : index
    %13 = vector.load %arg8[%c0_9, %c0_10] : memref<16x4xf32, #tpu.memory_space<vmem>>, vector<16x4xf32>
    tpu.vector_store %arg8[%c0_9, %c0_10], %12 {strides = array<i32>} : memref<16x4xf32, #tpu.memory_space<vmem>>, vector<16x4xf32>,
    %c1_i32 = arith.constant 1 : i32
    %c0_11 = arith.constant 0 : index
    %c0_12 = arith.constant 0 : index
    %14 = vector.load %arg7[%c0_11, %c0_12] : memref<16x4xf32, #tpu.memory_space<vmem>>, vector<16x4xf32>
    %cst_13 = arith.constant 1.600000e+01 : f32
    %15 = vector.broadcast %cst_13 : f32 to vector<16x4xf32>
    %16 = arith.divf %14, %15 : vector<16x4xf32>
    %c0_14 = arith.constant 0 : index
    %c0_15 = arith.constant 0 : index
    %17 = vector.load %arg8[%c0_14, %c0_15] : memref<16x4xf32, #tpu.memory_space<vmem>>, vector<16x4xf32>
    %cst_16 = arith.constant 1.600000e+01 : f32
    %18 = vector.broadcast %cst_16 : f32 to vector<16x4xf32>
    %19 = arith.divf %17, %18 : vector<16x4xf32>
    %20 = tpu.concatenate %16, %19 in 0 : vector<16x4xf32>, vector<16x4xf32> -> vector<32x4xf32>
    %c0_17 = arith.constant 0 : index
    %c0_18 = arith.constant 0 : index
    %21 = vector.load %arg2[%c0_17, %c0_18] : memref<4x2xf32, #tpu.memory_space<vmem>>, vector<4x2xf32>
    %cst_19 = arith.constant dense<0.000000e+00> : vector<32x2xf32>
    %22 = tpu.matmul %20, %21, %cst_19 {dimension_numbers = #tpu.dot_dimension_numbers<[1], [0], [0], [1], [0, 0, 1, 1], [], []>} : vector<32x4xf32>, vector<4x2xf32>, vector<32x2xf32> -> vector<32x2xf32>
    %c0_20 = arith.constant 0 : index
    %c0_21 = arith.constant 0 : index
    %23 = vector.load %arg3[%c0_20, %c0_21] : memref<1x2xf32, #tpu.memory_space<vmem>>, vector<1x2xf32>
    %24 = vector.broadcast %23 : vector<1x2xf32> to vector<32x2xf32>
    %25 = arith.addf %22, %24 : vector<32x2xf32>
    %cst_22 = arith.constant 3.000000e+00 : f32
    %26 = vector.broadcast %cst_22 : f32 to vector<32x2xf32>
    %27 = arith.addf %25, %26 : vector<32x2xf32>
    %cst_23 = arith.constant 0.000000e+00 : f32
    %cst_24 = arith.constant 6.000000e+00 : f32
    %28 = vector.broadcast %cst_23 : f32 to vector<32x2xf32>
    %29 = arith.maximumf %28, %27 : vector<32x2xf32>
    %30 = vector.broadcast %cst_24 : f32 to vector<32x2xf32>
    %31 = arith.minimumf %30, %29 : vector<32x2xf32>
    %32 = arith.mulf %25, %31 : vector<32x2xf32>
    %cst_25 = arith.constant 0.166666672 : f32
    %33 = vector.broadcast %cst_25 : f32 to vector<32x2xf32>
    %34 = arith.mulf %32, %33 : vector<32x2xf32>
    %c0_26 = arith.constant 0 : index
    %c0_27 = arith.constant 0 : index
    %35 = vector.load %arg4[%c0_26, %c0_27] : memref<2x8xf32, #tpu.memory_space<vmem>>, vector<2x8xf32>
    %cst_28 = arith.constant dense<0.000000e+00> : vector<32x8xf32>
    %36 = tpu.matmul %34, %35, %cst_28 {dimension_numbers = #tpu.dot_dimension_numbers<[1], [0], [0], [1], [0, 0, 1, 1], [], []>} : vector<32x2xf32>, vector<2x8xf32>, vector<32x8xf32> -> vector<32x8xf32>
    %c0_29 = arith.constant 0 : index
    %c0_30 = arith.constant 0 : index
    %37 = vector.load %arg5[%c0_29, %c0_30] : memref<1x8xf32, #tpu.memory_space<vmem>>, vector<1x8xf32>
    %38 = vector.broadcast %37 : vector<1x8xf32> to vector<32x8xf32>
    %39 = arith.addf %36, %38 : vector<32x8xf32>
    %40 = arith.negf %39 : vector<32x8xf32>
    %41 = math.exp %40 : vector<32x8xf32>
    %cst_31 = arith.constant 1.000000e+00 : f32
    %42 = vector.broadcast %cst_31 : f32 to vector<32x8xf32>
    %43 = arith.addf %42, %41 : vector<32x8xf32>
    %44 = arith.divf %42, %43 : vector<32x8xf32>
    %45 = vector.extract_strided_slice %44 {offsets = [0, 0], sizes = [16, 4], strides = [1, 1]} : vector<32x8xf32> to vector<16x4xf32>
    %c0_32 = arith.constant 0 : index
    %c0_33 = arith.constant 0 : index
    %46 = vector.load %arg7[%c0_32, %c0_33] : memref<16x4xf32, #tpu.memory_space<vmem>>, vector<16x4xf32>
    tpu.vector_store %arg7[%c0_32, %c0_33], %45 {strides = array<i32>} : memref<16x4xf32, #tpu.memory_space<vmem>>, vector<16x4xf32>,
    %47 = vector.extract_strided_slice %44 {offsets = [16, 4], sizes = [16, 4], strides = [1, 1]} : vector<32x8xf32> to vector<16x4xf32>
    %c0_34 = arith.constant 0 : index
    %c0_35 = arith.constant 0 : index
    %48 = vector.load %arg8[%c0_34, %c0_35] : memref<16x4xf32, #tpu.memory_space<vmem>>, vector<16x4xf32>
    tpu.vector_store %arg8[%c0_34, %c0_35], %47 {strides = array<i32>} : memref<16x4xf32, #tpu.memory_space<vmem>>, vector<16x4xf32>,
    %c0_i32_36 = arith.constant 0 : i32
    %c16_i32_37 = arith.constant 16 : i32
    %49 = arith.muli %c0_i32_36, %c16_i32_37 : i32
    %50 = tpu.assume_multiple %49, 16 : i32
    %c0_38 = arith.constant 0 : index
    %51 = arith.index_cast %50 : i32 to index
    %c0_39 = arith.constant 0 : index
    %c0_40 = arith.constant 0 : index
    %52 = vector.load %arg1[%c0_38, %51, %c0_39, %c0_40] : memref<1x16x16x4xf32, #tpu.memory_space<vmem>>, vector<1x16x16x4xf32>
    %53 = vector.shape_cast %52 : vector<1x16x16x4xf32> to vector<16x16x4xf32>
    %54 = arith.index_cast %50 : i32 to index
    %c0_41 = arith.constant 0 : index
    %55 = vector.load %arg7[%54, %c0_41] : memref<16x4xf32, #tpu.memory_space<vmem>>, vector<16x4xf32>
    %56 = vector.shape_cast %55 : vector<16x4xf32> to vector<16x1x4xf32>
    %57 = vector.broadcast %56 : vector<16x1x4xf32> to vector<16x16x4xf32>
    %58 = arith.mulf %53, %57 : vector<16x16x4xf32>
    %c0_42 = arith.constant 0 : index
    %c0_43 = arith.constant 0 : index
    %59 = vector.load %arg8[%c0_42, %c0_43] : memref<16x4xf32, #tpu.memory_space<vmem>>, vector<16x4xf32>
    %60 = vector.shape_cast %59 : vector<16x4xf32> to vector<1x16x4xf32>
    %61 = vector.broadcast %60 : vector<1x16x4xf32> to vector<16x16x4xf32>
    %62 = arith.mulf %58, %61 : vector<16x16x4xf32>
    %c0_44 = arith.constant 0 : index
    %63 = arith.index_cast %50 : i32 to index
    %c0_45 = arith.constant 0 : index
    %c0_46 = arith.constant 0 : index
    %64 = vector.load %arg6[%c0_44, %63, %c0_45, %c0_46] : memref<1x16x16x4xf32, #tpu.memory_space<vmem>>, vector<1x16x16x4xf32>
    %65 = vector.shape_cast %64 : vector<1x16x16x4xf32> to vector<16x16x4xf32>
    %66 = vector.shape_cast %62 : vector<16x16x4xf32> to vector<1x16x16x4xf32>
    tpu.vector_store %arg6[%c0_44, %63, %c0_45, %c0_46], %66 {strides = array<i32>} : memref<1x16x16x4xf32, #tpu.memory_space<vmem>>, vector<1x16x16x4xf32>,
    %c1_i32_47 = arith.constant 1 : i32
    return
  }
  func.func @transform_0(%arg0: i32) -> (i32, i32, i32, i32) {
    %c0_i32 = arith.constant 0 : i32
    %c0_i32_0 = arith.constant 0 : i32
    %c0_i32_1 = arith.constant 0 : i32
    %c0_i32_2 = arith.constant 0 : i32
    return %arg0, %c0_i32, %c0_i32_0, %c0_i32_1 : i32, i32, i32, i32
  }
  func.func @transform_1(%arg0: i32) -> (i32, i32) {
    %c0_i32 = arith.constant 0 : i32
    %c0_i32_0 = arith.constant 0 : i32
    %c0_i32_1 = arith.constant 0 : i32
    return %c0_i32, %c0_i32_0 : i32, i32
  }
  func.func @transform_2(%arg0: i32) -> (i32, i32) {
    %c0_i32 = arith.constant 0 : i32
    %c0_i32_0 = arith.constant 0 : i32
    %c0_i32_1 = arith.constant 0 : i32
    return %c0_i32, %c0_i32_0 : i32, i32
  }
  func.func @transform_3(%arg0: i32) -> (i32, i32) {
    %c0_i32 = arith.constant 0 : i32
    %c0_i32_0 = arith.constant 0 : i32
    %c0_i32_1 = arith.constant 0 : i32
    return %c0_i32, %c0_i32_0 : i32, i32
  }
  func.func @transform_4(%arg0: i32) -> (i32, i32) {
    %c0_i32 = arith.constant 0 : i32
    %c0_i32_0 = arith.constant 0 : i32
    %c0_i32_1 = arith.constant 0 : i32
    return %c0_i32, %c0_i32_0 : i32, i32
  }
  func.func @transform_5(%arg0: i32) -> (i32, i32, i32, i32) {
    %c0_i32 = arith.constant 0 : i32
    %c0_i32_0 = arith.constant 0 : i32
    %c0_i32_1 = arith.constant 0 : i32
    %c0_i32_2 = arith.constant 0 : i32
    return %arg0, %c0_i32, %c0_i32_0, %c0_i32_1 : i32, i32, i32, i32
  }
}

</mosaic_0001>

<bundles_post_ra>
// kernel: tpu_custom_call.1
= control target key start
LH: loop header
LB: loop body
LE: loop exit
PB: predicated region body
PF: predicated region fallthrough
CT: control target
= control target key end

     0   :  { %s1260_s18 = smov 0   ;;  %s1743_s0 = inlined_call_operand.vmem [shape: f32[2,16,16,4], index: 0, kind: input, shape index: {}]   ;;  %s1744_s1 = inlined_call_operand.vmem [shape: f32[4,2], index: 1, kind: input, shape index: {}]   ;;  %s1745_s2 = inlined_call_operand.vmem [shape: f32[1,2], index: 2, kind: input, shape index: {}]   ;;  %s1746_s3 = inlined_call_operand.vmem [shape: f32[2,8], index: 3, kind: input, shape index: {}]   ;;  %s1747_s4 = inlined_call_operand.vmem [shape: f32[1,8], index: 4, kind: input, shape index: {}]   ;;  %s1748_s5 = inlined_call_operand.vmem [shape: f32[2,16,16,4], index: 5, kind: output, shape index: {}]  }
   0x1 LB: > { %s1135_s19 = sadd.s32 4294967295, %s1225_s18   ;;  %p1139_p0 = scmp.ge.s32.totalorder %s1225_s18, 1  ;;  %s1225_s18 = sphi %s1260_s18, %s15_s18  }
   0x2   : > { %p187_p1 = scmp.lt.s32.totalorder %s1225_s18, 3 }
   0x4   : > { %p188_p2 = pnand %p1139_p0, %p187_p1 }
   0x6   : > { %191 = sbr.rel (%p188_p2) target bundleno = 677 (0x2a5), region = 40 }
   0xb   : > { %v492_v0 = vld [vmem:[%s1744_s1] sm:$0xf]  ;;  %vm512_vm0 = vcmask 1043456   ;;  %p215_p3 = scmp.lt.s32.totalorder %s1135_s19, 1  ;;  %vm225_vm1 = vcmask 31744   ;;  %v1227_v1 = vmov 0.0  }
   0xc   : > { %1174 = vmatprep.subr.msk.mxu0 %vm512_vm0, %v492_v0  ;;  %226 = vst.msk [vmem:[#allocation3] sm:$0xff] %vm225_vm1, %v1227_v1  ;;  %227 = vst.msk [vmem:[#allocation3 + $0x8] sm:$0xff] %vm225_vm1, %v1227_v1  ;;  %vm422_vm2 = vcmask 1041409   ;;  %vm424_vm3 = vcmask 1042434   ;;  %vm426_vm4 = vcmask 1043459   ;;  %vm428_vm5 = vcmask 1044484  }
   0xd   : > { %1175 = vmatpush3.msk.msra.mxu0 %vm512_vm0, %v492_v0  ;;  %s1852_s19 = smov (!%p215_p3, %s1135_s19), 1  ;;  %vm430_vm6 = vcmask 1045509   ;;  %vm432_vm7 = vcmask 1046534   ;;  %vm434_vm8 = vcmask 1047559   ;;  %vm642_vm9 = vcmask 1041408   ;;  %s1228_s7 = smov 124  }
   0xe   : > { %s1162_s22 = sshll.u32 %s1852_s19, 8  ;;  %vm629_vm10 = vcmask 15360  }
   0xf   : > { %s1281_s25 = scalar_lea.vmem %s1743_s0, %s1162_s22  ;;  %s1669_s10 = scalar_lea.vmem %s1748_s5, %s1162_s22 }
  0x10   : > { %v1284_v2 = vld [vmem:[%s1281_s25] sm:$0xff]  ;;  %v1287_v3 = vld [vmem:[%s1281_s25 + $0x8] sm:$0xff]  ;;  %v1290_v4 = vld [vmem:[%s1281_s25 + $0x10] sm:$0xff] }
  0x11   : > { %1783 = vst [vmem:[#allocation4_spill] sm:$0xff] %v1284_v2  ;;  %1784 = vst [vmem:[#allocation5_spill] sm:$0xff] %v1287_v3  ;;  %v1293_v5 = vld [vmem:[%s1281_s25 + $0x18] sm:$0xff]  ;;  %v1296_v6 = vld [vmem:[%s1281_s25 + $0x20] sm:$0xff]  ;;  %v1303_v8 = vsel %vm225_vm1, %v1284_v2, 0.0  ;;  %v1307_v9 = vsel %vm225_vm1, %v1287_v3, 0.0 }
  0x12   : > { %1785 = vst [vmem:[#allocation6_spill] sm:$0xff] %v1290_v4  ;;  %1786 = vst [vmem:[#allocation7_spill] sm:$0xff] %v1293_v5  ;;  %v1299_v7 = vld [vmem:[%s1281_s25 + $0x28] sm:$0xff]  ;;  %v1311_v10 = vsel %vm225_vm1, %v1290_v4, 0.0  ;;  %v1314_v11 = vld [vmem:[%s1281_s25 + $0x30] sm:$0xff]  ;;  %v264_v14 = vadd.f32 %v1307_v9, %v1303_v8  ;;  %v1326_v15 = vsel %vm225_vm1, %v1293_v5, 0.0 }
  0x13   : > { %1787 = vst [vmem:[#allocation8_spill] sm:$0xff] %v1296_v6  ;;  %1788 = vst [vmem:[#allocation9_spill] sm:$0xff] %v1299_v7  ;;  %v1317_v12 = vld [vmem:[%s1281_s25 + $0x38] sm:$0xff]  ;;  %v1320_v13 = vld [vmem:[%s1281_s25 + $0x40] sm:$0xff]  ;;  %v1330_v16 = vsel %vm225_vm1, %v1296_v6, 0.0  ;;  %v1334_v17 = vsel %vm225_vm1, %v1299_v7, 0.0  ;;  %v273_v21 = vadd.f32 %v1326_v15, %v1311_v10 }
  0x14   : > { %1789 = vst [vmem:[#allocation10_spill] sm:$0xff] %v1314_v11  ;;  %1790 = vst [vmem:[#allocation11_spill] sm:$0xff] %v1317_v12  ;;  %v1337_v18 = vld [vmem:[%s1281_s25 + $0x48] sm:$0xff]  ;;  %v1340_v19 = vld [vmem:[%s1281_s25 + $0x50] sm:$0xff]  ;;  %v282_v22 = vadd.f32 %v1334_v17, %v1330_v16  ;;  %v1351_v23 = vsel %vm225_vm1, %v1314_v11, 0.0  ;;  %v1355_v24 = vsel %vm225_vm1, %v1317_v12, 0.0 }
  0x15   : > { %1791 = vst [vmem:[#allocation12_spill] sm:$0xff] %v1320_v13  ;;  %1792 = vst [vmem:[#allocation13_spill] sm:$0xff] %v1337_v18  ;;  %v1343_v20 = vld [vmem:[%s1281_s25 + $0x58] sm:$0xff]  ;;  %v1358_v25 = vld [vmem:[%s1281_s25 + $0x60] sm:$0xff]  ;;  %v265_v26 = vrot.slane %v264_v14, 4  ;;  %v291_v27 = vadd.f32 %v1355_v24, %v1351_v23  ;;  %v1364_v28 = vsel %vm225_vm1, %v1320_v13, 0.0 }
  0x16   : > { %1793 = vst [vmem:[#allocation14_spill] sm:$0xff] %v1340_v19  ;;  %1794 = vst [vmem:[#allocation15_spill] sm:$0xff] %v1343_v20  ;;  %v1368_v29 = vsel %vm225_vm1, %v1337_v18, 0.0  ;;  %v1371_v30 = vld [vmem:[%s1281_s25 + $0x68] sm:$0xff]  ;;  %v1374_v31 = vld [vmem:[%s1281_s25 + $0x70] sm:$0xff]  ;;  %v274_v32 = vrot.slane %v273_v21, 4 }
  0x17   : > { %1795 = vst [vmem:[#allocation16_spill] sm:$0xff] %v1358_v25  ;;  %1796 = vst [vmem:[#allocation17_spill] sm:$0xff] %v1371_v30  ;;  %v283_v33 = vrot.slane %v282_v22, 4  ;;  %v300_v34 = vadd.f32 %v1368_v29, %v1364_v28  ;;  %v1380_v35 = vsel %vm225_vm1, %v1340_v19, 0.0  ;;  %v266_v36 = vadd.f32 %v265_v26, %v264_v14  ;;  %v1391_v40 = vld [vmem:[%s1281_s25 + $0x78] sm:$0xff]  ;;  %v1412_v1 = vld [vmem:[%s1281_s25 + $0x80] sm:$0xff] }
  0x18   : > { %1797 = vst [vmem:[#allocation18_spill] sm:$0xff] %v1374_v31  ;;  %v292_v37 = vrot.slane %v291_v27, 4  ;;  %v1384_v38 = vsel %vm225_vm1, %v1343_v20, 0.0  ;;  %v1388_v39 = vsel %vm225_vm1, %v1358_v25, 0.0  ;;  %1798 = vst [vmem:[#allocation19_spill] sm:$0xff] %v1391_v40  ;;  %v275_v41 = vadd.f32 %v274_v32, %v273_v21  ;;  %v1418_v32 = vld [vmem:[%s1281_s25 + $0x90] sm:$0xff] }
  0x19   : > { %v284_v42 = vadd.f32 %v283_v33, %v282_v22  ;;  %v301_v43 = vrot.slane %v300_v34, 4  ;;  %v309_v44 = vadd.f32 %v1384_v38, %v1380_v35  ;;  %v267_v45 = vrot.slane %v266_v36, 2  ;;  %1799 = vst [vmem:[#allocation20_spill] sm:$0xff] %v1412_v1  ;;  %1801 = vst [vmem:[#allocation22_spill] sm:$0xff] %v1418_v32  ;;  %v1535_v6 = vld [vmem:[%s1281_s25 + $0xf8] sm:$0xff] }
  0x1a   : > { %v293_v46 = vadd.f32 %v292_v37, %v291_v27  ;;  %v1397_v47 = vsel %vm225_vm1, %v1371_v30, 0.0  ;;  %v1401_v48 = vsel %vm225_vm1, %v1374_v31, 0.0  ;;  %v276_v49 = vrot.slane %v275_v41, 2  ;;  %v1415_v27 = vld [vmem:[%s1281_s25 + $0x88] sm:$0xff]  ;;  %1815 = vst [vmem:[#allocation36_spill] sm:$0xff] %v1535_v6 }
  0x1b   : > { %v285_v50 = vrot.slane %v284_v42, 2  ;;  %v302_v51 = vadd.f32 %v301_v43, %v300_v34  ;;  %v310_v52 = vrot.slane %v309_v44, 4  ;;  %v268_v53 = vadd.f32 %v267_v45, %v266_v36  ;;  %1800 = vst [vmem:[#allocation21_spill] sm:$0xff] %v1415_v27 }
  0x1c   : > { %v294_v54 = vrot.slane %v293_v46, 2  ;;  %v318_v55 = vadd.f32 %v1397_v47, %v1388_v39  ;;  %v1407_v56 = vsel %vm225_vm1, %v1391_v40, 0.0  ;;  %v277_v57 = vadd.f32 %v276_v49, %v275_v41  ;;  %v1423_v41 = vld [vmem:[%s1281_s25 + $0x98] sm:$0xff]  ;;  %v1433_v49 = vld [vmem:[%s1281_s25 + $0xa8] sm:$0xff] }
  0x1d   : > { %v286_v58 = vadd.f32 %v285_v50, %v284_v42  ;;  %v303_v59 = vrot.slane %v302_v51, 2  ;;  %v311_v60 = vadd.f32 %v310_v52, %v309_v44  ;;  %v269_v61 = vrot.slane %v268_v53, 1  ;;  %1802 = vst [vmem:[#allocation23_spill] sm:$0xff] %v1423_v41  ;;  %1804 = vst [vmem:[#allocation25_spill] sm:$0xff] %v1433_v49 }
  0x1e   : > { %v295_v62 = vadd.f32 %v294_v54, %v293_v46  ;;  %v319_v63 = vrot.slane %v318_v55, 4  ;;  %v327_v0 = vadd.f32 %v1407_v56, %v1401_v48  ;;  %v278_v14 = vrot.slane %v277_v57, 1  ;;  %v1430_v46 = vld [vmem:[%s1281_s25 + $0xa0] sm:$0xff] }
  0x1f   : > { %v287_v21 = vrot.slane %v286_v58, 1  ;;  %v304_v22 = vadd.f32 %v303_v59, %v302_v51  ;;  %v312_v26 = vrot.slane %v311_v60, 2  ;;  %v1420_v33 = vadd.f32 %v269_v61, %v268_v53  ;;  %1803 = vst [vmem:[#allocation24_spill] sm:$0xff] %v1430_v46  ;;  %v1452_v59 = vld [vmem:[%s1281_s25 + $0xb0] sm:$0xff]  ;;  %v1458_v61 = vld [vmem:[%s1281_s25 + $0xc0] sm:$0xff] }
  0x20   : > { %v296_v34 = vrot.slane %v295_v62, 1  ;;  %v320_v36 = vadd.f32 %v319_v63, %v318_v55  ;;  %v328_v37 = vrot.slane %v327_v0, 4  ;;  %v1425_v42 = vadd.f32 %v278_v14, %v277_v57  ;;  %1805 = vst [vmem:[#allocation26_spill] sm:$0xff] %v1452_v59  ;;  %1807 = vst [vmem:[#allocation28_spill] sm:$0xff] %v1458_v61 }
  0x21   : > { %v1427_v43 = vadd.f32 %v287_v21, %v286_v58  ;;  %v305_v44 = vrot.slane %v304_v22, 1  ;;  %v313_v45 = vadd.f32 %v312_v26, %v311_v60  ;;  %v1439_v53 = vsel %vm225_vm1, %v1412_v1, 0.0  ;;  %v1455_v60 = vld [vmem:[%s1281_s25 + $0xb8] sm:$0xff] }
  0x22   : > { %v1435_v50 = vadd.f32 %v296_v34, %v295_v62  ;;  %v321_v51 = vrot.slane %v320_v36, 2  ;;  %v329_v52 = vadd.f32 %v328_v37, %v327_v0  ;;  %v1445_v57 = vsel %vm225_vm1, %v1415_v27, 0.0  ;;  %1806 = vst [vmem:[#allocation27_spill] sm:$0xff] %v1455_v60  ;;  %v1482_v37 = vld [vmem:[%s1281_s25 + $0xd0] sm:$0xff] }
  0x23   : > { %v1441_v54 = vadd.f32 %v305_v44, %v304_v22  ;;  %v314_v55 = vrot.slane %v313_v45, 1  ;;  %v1449_v58 = vsel %vm225_vm1, %v1418_v32, 0.0  ;;  %v336_v0 = vadd.f32 %v1445_v57, %v1439_v53  ;;  %1809 = vst [vmem:[#allocation30_spill] sm:$0xff] %v1482_v37 }
  0x24   : > { %v322_v62 = vadd.f32 %v321_v51, %v320_v36  ;;  %v330_v63 = vrot.slane %v329_v52, 2  ;;  %v1464_v14 = vsel %vm225_vm1, %v1423_v41, 0.0  ;;  %v1472_v26 = vsel %vm225_vm1, %v1430_v46, 0.0  ;;  %v1479_v36 = vld [vmem:[%s1281_s25 + $0xc8] sm:$0xff] }
  0x25   : > { %v1466_v21 = vadd.f32 %v314_v55, %v313_v45  ;;  %v345_v22 = vadd.f32 %v1464_v14, %v1449_v58  ;;  %v1476_v34 = vsel %vm225_vm1, %v1433_v49, 0.0  ;;  %1808 = vst [vmem:[#allocation29_spill] sm:$0xff] %v1479_v36  ;;  %v337_v45 = vrot.slane %v336_v0, 4 }
  0x26   : > { %v323_v44 = vrot.slane %v322_v62, 1  ;;  %v331_v51 = vadd.f32 %v330_v63, %v329_v52  ;;  %v354_v55 = vadd.f32 %v1476_v34, %v1472_v26  ;;  %v1488_v30 = vsel %vm225_vm1, %v1452_v59, 0.0  ;;  %v1499_v52 = vld [vmem:[%s1281_s25 + $0xd8] sm:$0xff]  ;;  %v1502_v63 = vld [vmem:[%s1281_s25 + $0xe0] sm:$0xff] }
  0x27   : > { %v346_v40 = vrot.slane %v345_v22, 4  ;;  %v1492_v20 = vsel %vm225_vm1, %v1455_v60, 0.0  ;;  %v1496_v18 = vsel %vm225_vm1, %v1458_v61, 0.0  ;;  %1810 = vst [vmem:[#allocation31_spill] sm:$0xff] %v1499_v52  ;;  %1811 = vst [vmem:[#allocation32_spill] sm:$0xff] %v1502_v63  ;;  %v338_v5 = vadd.f32 %v337_v45, %v336_v0 }
  0x28   : > { %v1504_v12 = vadd.f32 %v323_v44, %v322_v62  ;;  %v332_v7 = vrot.slane %v331_v51, 1  ;;  %v355_v49 = vrot.slane %v354_v55, 4  ;;  %v363_v60 = vadd.f32 %v1492_v20, %v1488_v30  ;;  %v1517_v62 = vld [vmem:[%s1281_s25 + $0xe8] sm:$0xff]  ;;  %v1520_v44 = vld [vmem:[%s1281_s25 + $0xf0] sm:$0xff] }
  0x29   : > { %v347_v41 = vadd.f32 %v346_v40, %v345_v22  ;;  %v1510_v31 = vsel %vm225_vm1, %v1479_v36, 0.0  ;;  %v1514_v25 = vsel %vm225_vm1, %v1482_v37, 0.0  ;;  %1812 = vst [vmem:[#allocation33_spill] sm:$0xff] %v1517_v62  ;;  %1813 = vst [vmem:[#allocation34_spill] sm:$0xff] %v1520_v44  ;;  %v339_v40 = vrot.slane %v338_v5, 2 }
  0x2a   : > { %v1522_v0 = vadd.f32 %v332_v7, %v331_v51  ;;  %v356_v22 = vadd.f32 %v355_v49, %v354_v55  ;;  %v372_v45 = vadd.f32 %v1510_v31, %v1496_v18  ;;  %v364_v36 = vrot.slane %v363_v60, 4 }
  0x2b   : > { %v348_v19 = vrot.slane %v347_v41, 2  ;;  %v1528_v13 = vsel %vm225_vm1, %v1499_v52, 0.0  ;;  %v1532_v11 = vsel %vm225_vm1, %v1502_v63, 0.0  ;;  %v340_v7 = vadd.f32 %v339_v40, %v338_v5 }
  0x2c   : > { %1814 = vst [vmem:[#allocation35_spill] sm:$0xff] %v1532_v11  ;;  %v357_v51 = vrot.slane %v356_v22, 2  ;;  %v373_v49 = vrot.slane %v372_v45, 4  ;;  %v381_v55 = vadd.f32 %v1528_v13, %v1514_v25  ;;  %v365_v37 = vadd.f32 %v364_v36, %v363_v60 }
  0x2d   : > { %v349_v4 = vadd.f32 %v348_v19, %v347_v41  ;;  %v1541_v52 = vsel %vm225_vm1, %v1517_v62, 0.0  ;;  %v1545_v63 = vsel %vm225_vm1, %v1520_v44, 0.0  ;;  %v341_v61 = vrot.slane %v340_v7, 1 }
  0x2e   : > { %1816 = vst [vmem:[#allocation37_spill] sm:$0xff] %v1541_v52  ;;  %v358_v59 = vadd.f32 %v357_v51, %v356_v22  ;;  %v374_v5 = vadd.f32 %v373_v49, %v372_v45  ;;  %v382_v40 = vrot.slane %v381_v55, 4  ;;  %v366_v3 = vrot.slane %v365_v37, 2 }
  0x2f   : > { %v350_v46 = vrot.slane %v349_v4, 1  ;;  %v390_v32 = vadd.f32 %v1541_v52, %v1532_v11  ;;  %v1551_v19 = vsel %vm225_vm1, %v1535_v6, 0.0  ;;  %v342_v41 = vadd.f32 %v341_v61, %v340_v7 }
  0x30   : > { %v359_v60 = vrot.slane %v358_v59, 1  ;;  %v375_v36 = vrot.slane %v374_v5, 2  ;;  %v383_v62 = vadd.f32 %v382_v40, %v381_v55  ;;  %v367_v2 = vadd.f32 %v366_v3, %v365_v37 }
  0x31   : > { %v351_v44 = vadd.f32 %v350_v46, %v349_v4  ;;  %v391_v27 = vrot.slane %v390_v32, 4  ;;  %v399_v22 = vadd.f32 %v1551_v19, %v1545_v63  ;;  %v423_v1 = vsel %vm422_vm2, %v1425_v42, %v1420_v33 }
  0x32   : > { %v360_v45 = vadd.f32 %v359_v60, %v358_v59  ;;  %v376_v51 = vadd.f32 %v375_v36, %v374_v5  ;;  %v384_v49 = vrot.slane %v383_v62, 2  ;;  %v368_v52 = vrot.slane %v367_v2, 1 }
  0x33   : > { %v392_v6 = vadd.f32 %v391_v27, %v390_v32  ;;  %v400_v11 = vrot.slane %v399_v22, 4  ;;  %v425_v61 = vsel %vm424_vm3, %v1427_v43, %v423_v1  ;;  %v436_v46 = vsel %vm422_vm2, %v351_v44, %v342_v41 }
  0x34   : > { %v377_v7 = vrot.slane %v376_v51, 1  ;;  %v385_v4 = vadd.f32 %v384_v49, %v383_v62  ;;  %v427_v3 = vsel %vm426_vm4, %v1435_v50, %v425_v61  ;;  %v369_v59 = vadd.f32 %v368_v52, %v367_v2 }
  0x35   : > { %v393_v37 = vrot.slane %v392_v6, 2  ;;  %v401_v55 = vadd.f32 %v400_v11, %v399_v22  ;;  %v429_v5 = vsel %vm428_vm5, %v1441_v54, %v427_v3  ;;  %v437_v1 = vsel %vm424_vm3, %v360_v45, %v436_v46 }
  0x36   : > { %v378_v33 = vadd.f32 %v377_v7, %v376_v51  ;;  %v386_v42 = vrot.slane %v385_v4, 1  ;;  %v431_v27 = vsel %vm430_vm6, %v1466_v21, %v429_v5  ;;  %v438_v62 = vsel %vm426_vm4, %v369_v59, %v437_v1  ;;  %v1817_v59 = vld [vmem:[#allocation35_spill] sm:$0xff] }
  0x37   : > { %v394_v32 = vadd.f32 %v393_v37, %v392_v6  ;;  %v402_v43 = vrot.slane %v401_v55, 2  ;;  %v433_v50 = vsel %vm432_vm7, %v1504_v12, %v431_v27  ;;  %v449_v52 = vadd.f32 %v1311_v10, %v1303_v8  ;;  %v447_v37 = vld [vmem:[#allocation3] sm:$0xff] }
  0x38   : > { %v387_v2 = vadd.f32 %v386_v42, %v385_v4  ;;  %v435_v11 = vsel %vm434_vm8, %v1522_v0, %v433_v50  ;;  %v439_v54 = vsel %vm428_vm5, %v378_v33, %v438_v62  ;;  %v464_v6 = vadd.f32 %v1326_v15, %v1307_v9 }
  0x39   : > { %v395_v44 = vrot.slane %v394_v32, 1  ;;  %v403_v21 = vadd.f32 %v402_v43, %v401_v55  ;;  %445 = vst.msk [vmem:[#allocation2] sm:$0xff] %vm225_vm1, %v435_v11  ;;  %v450_v40 = vadd.f32 %v449_v52, %v1330_v16 }
  0x3a   : > { %v440_v12 = vsel %vm430_vm6, %v387_v2, %v439_v54  ;;  %v465_v0 = vadd.f32 %v464_v6, %v1334_v17 }
  0x3b   : > { %v396_v41 = vadd.f32 %v395_v44, %v394_v32  ;;  %v404_v60 = vrot.slane %v403_v21, 1  ;;  %v451_v36 = vadd.f32 %v450_v40, %v1351_v23 }
  0x3c   : > { %v466_v10 = vadd.f32 %v465_v0, %v1355_v24 }
  0x3d   : > { %v405_v22 = vadd.f32 %v404_v60, %v403_v21  ;;  %v441_v8 = vsel %vm432_vm7, %v396_v41, %v440_v12  ;;  %v452_v45 = vadd.f32 %v451_v36, %v1364_v28 }
  0x3e   : > { %v467_v9 = vadd.f32 %v466_v10, %v1368_v29 }
  0x3f   : > { %v442_v51 = vsel %vm434_vm8, %v405_v22, %v441_v8  ;;  %v453_v15 = vadd.f32 %v452_v45, %v1380_v35 }
  0x40   : > { %v483_v16 = vld [vmem:[#allocation2] sm:$0xff]  ;;  %446 = vst.msk [vmem:[#allocation2 + $0x8] sm:$0xff] %vm225_vm1, %v442_v51  ;;  %v468_v17 = vadd.f32 %v467_v9, %v1384_v38 }
  0x41   : > { %v486_v49 = vmul.f32 0.0625, %v483_v16  ;;  %v454_v23 = vadd.f32 %v453_v15, %v1388_v39 }
  0x42   : > { %v469_v61 = vadd.f32 %v468_v17, %v1397_v47  ;;  %v1150_v17 = vld [vmem:[%s1747_s4] ss:$0 sm:$0xff] }
  0x43   : > { %1176 = vmatprep.mubr.msk.f32.mxu0 %vm225_vm1, %v486_v49  ;;  %v455_v24 = vadd.f32 %v454_v23, %v1401_v48 }
  0x44   : > { %v470_v28 = vadd.f32 %v469_v61, %v1407_v56 }
  0x45   : > { %v456_v29 = vadd.f32 %v455_v24, %v1439_v53 }
  0x46   : > { %v471_v35 = vadd.f32 %v470_v28, %v1445_v57 }
  0x47   : > { %v484_v7 = vld [vmem:[#allocation2 + $0x8] sm:$0xff]  ;;  %v457_v4 = vadd.f32 %v456_v29, %v1449_v58 }
  0x48   : > { %v487_v3 = vmul.f32 0.0625, %v484_v7  ;;  %v472_v38 = vadd.f32 %v471_v35, %v1464_v14 }
  0x49   : > { %v458_v39 = vadd.f32 %v457_v4, %v1472_v26  ;;  %v1818_v26 = vld [vmem:[#allocation37_spill] sm:$0xff] }
  0x4a   : > { %1177 = vmatmul.mubr.msk.f32.vlgmr.msra.gmra.mxu0 %vm225_vm1, %v487_v3  ;;  %v473_v47 = vadd.f32 %v472_v38, %v1476_v34  ;;  %v448_v34 = vld [vmem:[#allocation3 + $0x8] sm:$0xff] }
  0x4b   : > { %v459_v48 = vadd.f32 %v458_v39, %v1488_v30 }
  0x4c   : > { %v474_v56 = vadd.f32 %v473_v47, %v1492_v20 }
  0x4d   : > { %v460_v53 = vadd.f32 %v459_v48, %v1496_v18 }
  0x4e   : > { %v475_v57 = vadd.f32 %v474_v56, %v1510_v31 }
  0x4f   : > { %v461_v46 = vadd.f32 %v460_v53, %v1514_v25 }
  0x50   : > { %v476_v58 = vadd.f32 %v475_v57, %v1528_v13 }
  0x51   : > { %v462_v14 = vadd.f32 %v461_v46, %v1817_v59 }
  0x52   : > { %v477_v55 = vadd.f32 %v476_v58, %v1818_v26 }
  0x53   : > { %v463_v5 = vadd.f32 %v462_v14, %v1545_v63  ;;  %v621_v63 = vld [vmem:[%s1746_s3] sm:$0x3] }
  0x54   : > { %v478_v30 = vadd.f32 %v477_v55, %v1551_v19  ;;  %1182 = vmatprep.subr.msk.mxu1 %vm642_vm9, %v621_v63  ;;  %v1144_v19 = vld [vmem:[%s1745_s2] ss:$0 sm:$0xff] }
  0x55   : > { %v479_v33 = vadd.f32 %v463_v5, %v447_v37  ;;  %1183 = vmatpush3.msk.msra.mxu1 %vm642_vm9, %v621_v63  ;;  %v1229_v5 = vmov 1966171168  }
  0x56   : > { %v480_v20 = vadd.f32 %v478_v30, %v448_v34  ;;  %v805_v34 = vunpack.c.l.s4 %v1229_v5  ;;  %v807_v30 = vlaneseq  ;;  %v1825_v5 = vld [vmem:[#allocation26_spill] sm:$0xff] }
  0x57   : > { %481 = vst.msk [vmem:[#allocation3] sm:$0xff] %vm225_vm1, %v479_v33 }
  0x58   : > { %482 = vst.msk [vmem:[#allocation3 + $0x8] sm:$0xff] %vm225_vm1, %v480_v20  ;;  %v806_v33 = vunpack.c.0.s8 %v805_v34  ;;  %v808_v20 = vshrl.u32 %v807_v30, 7  ;;  %v1826_v30 = vld [vmem:[#allocation28_spill] sm:$0xff] }
  0x5e   : > { %v488_v18 = vld [vmem:[#allocation3] sm:$0xff] }
  0x5f   : > { %v490_v25 = vmul.f32 0.0625, %v488_v18  ;;  %v489_v31 = vld [vmem:[#allocation3 + $0x8] sm:$0xff] }
  0x60   : > { %v491_v13 = vmul.f32 0.0625, %v489_v31 }
  0x61   : > { %1179 = vmatprep.mubr.msk.f32.mxu0 %vm225_vm1, %v490_v25  ;;  %v809_v25 = vsub.s32 %v806_v33, %v808_v20 }
  0x62   : > { %1180 = vmatmul.mubr.msk.f32.gmra.mxu0 %vm225_vm1, %v491_v13 }
 0x10a   : > { %v1178_v42 = vpop.f32.mrf.mxu0 }
 0x10b   : > { %v588_v27 = vadd.f32 %v1178_v42, %v1144_v19 }
 0x10c   : > { %v582_v1 = vpop.f32.mrf.mxu0 }
 0x10d   : > { %v602_v32 = vadd.f32 3.0, %v588_v27  ;;  %v583_v43 = vadd.f32 %v1144_v19, %v582_v1 }
 0x10f   : > { %v606_v50 = vmax.f32 %v602_v32, 0.0  ;;  %v601_v62 = vadd.f32 3.0, %v583_v43 }
 0x111   : > { %v610_v2 = vmin.f32 %v606_v50, 6.0  ;;  %v605_v11 = vmax.f32 %v601_v62, 0.0 }
 0x113   : > { %v609_v54 = vmin.f32 %v605_v11, 6.0  ;;  %v614_v52 = vmul.f32 %v610_v2, %v588_v27 }
 0x115   : > { %v613_v44 = vmul.f32 %v609_v54, %v583_v43  ;;  %v618_v6 = vmul.f32 0.16666667, %v614_v52  ;;  %v903_v54 = vsub.s32 0, %v808_v20  ;;  %v1827_v20 = vld [vmem:[#allocation30_spill] sm:$0xff] }
 0x117   : > { %v617_v21 = vmul.f32 0.16666667, %v613_v44 }
 0x119   : > { %1184 = vmatprep.mubr.msk.f32.mxu1 %vm629_vm10, %v617_v21 }
 0x11a   : > { %1185 = vmatmul.mubr.msk.f32.vlgmr.msra.gmra.mxu1 %vm629_vm10, %v618_v6 }
 0x122   : > { %v1181_v12 = vpop.f32.mrf.mxu0 }
 0x123   : > { %v598_v40 = vadd.f32 %v1181_v12, %v1144_v19 }
 0x124   : > { %v592_v41 = vpop.f32.mrf.mxu0 }
 0x125   : > { %v604_v60 = vadd.f32 3.0, %v598_v40  ;;  %v593_v0 = vadd.f32 %v1144_v19, %v592_v41 }
 0x127   : > { %v608_v36 = vmax.f32 %v604_v60, 0.0  ;;  %v603_v22 = vadd.f32 3.0, %v593_v0 }
 0x129   : > { %v612_v8 = vmin.f32 %v608_v36, 6.0  ;;  %v607_v10 = vmax.f32 %v603_v22, 0.0 }
 0x12b   : > { %v611_v45 = vmin.f32 %v607_v10, 6.0  ;;  %v616_v51 = vmul.f32 %v612_v8, %v598_v40 }
 0x12d   : > { %v615_v9 = vmul.f32 %v611_v45, %v593_v0  ;;  %v620_v16 = vmul.f32 0.16666667, %v616_v51 }
 0x12f   : > { %v619_v15 = vmul.f32 0.16666667, %v615_v9 }
 0x131   : > { %1187 = vmatprep.mubr.msk.f32.mxu1 %vm629_vm10, %v619_v15 }
 0x132   : > { %1188 = vmatmul.mubr.msk.f32.gmra.mxu1 %vm629_vm10, %v620_v16 }
 0x1da   : > { %v1186_v49 = vpop.f32.mrf.mxu1 }
 0x1db   : > { %v718_v23 = vadd.f32 %v1186_v49, %v1150_v17 }
 0x1dc   : > { %v712_v61 = vpop.f32.mrf.mxu1 }
 0x1dd   : > { %v1157_v24 = vmul.f32 -1.442695, %v718_v23  ;;  %v713_v28 = vadd.f32 %v1150_v17, %v712_v61  ;;  %v1819_v23 = vld [vmem:[#allocation20_spill] sm:$0xff] }
 0x1df   : > { %1203 = vpow2.f32 %v1157_v24  ;;  %v1156_v29 = vmul.f32 -1.442695, %v713_v28  ;;  %v1820_v24 = vld [vmem:[#allocation21_spill] sm:$0xff] }
 0x1e1   : > { %1205 = vpow2.f32 %v1156_v29 }
 0x1ec   : > { %v1204_v35 = vpop.eup %1203 }
 0x1ed   : > { %v744_v7 = vadd.f32 1.0, %v1204_v35 }
 0x1ee   : > { %v1206_v4 = vpop.eup %1205 }
 0x1ef   : > { %1207 = vrcp.f32 %v744_v7  ;;  %v743_v3 = vadd.f32 1.0, %v1206_v4 }
 0x1f1   : > { %1209 = vrcp.f32 %v743_v3 }
 0x1f2   : > { %v1189_v38 = vpop.f32.mrf.mxu1 }
 0x1f3   : > { %v728_v48 = vadd.f32 %v1189_v38, %v1150_v17 }
 0x1f4   : > { %v722_v39 = vpop.f32.mrf.mxu1 }
 0x1f5   : > { %v723_v47 = vadd.f32 %v1150_v17, %v722_v39  ;;  %v1159_v53 = vmul.f32 -1.442695, %v728_v48 }
 0x1f7   : > { %v1158_v56 = vmul.f32 -1.442695, %v723_v47 }
 0x1f9   : > { %1211 = vpow2.f32 %v1158_v56 }
 0x1fa   : > { %1213 = vpow2.f32 %v1159_v53  ;;  %v1821_v53 = vld [vmem:[#allocation4_spill] sm:$0xff] }
 0x1fc   : > { %v1208_v57 = vpop.eup %1207 }
 0x1fd   : > { %756 = vst.msk [vmem:[#allocation2 + $0x8] sm:$0xff] %vm225_vm1, %v1208_v57 }
 0x1fe   : > { %v1210_v46 = vpop.eup %1209 }
 0x1ff   : > { %755 = vst.msk [vmem:[#allocation2] sm:$0xff] %vm225_vm1, %v1210_v46  ;;  %v1822_v46 = vld [vmem:[#allocation22_spill] sm:$0xff] }
 0x204   : > { %v800_v18 = vld [vmem:[#allocation2 + $0x8] sm:$0xff] }
 0x205   : > { %v852_v13 = vcombine.high %v800_v18, %v800_v18  ;;  %v859_v19 = vrot.slane %v800_v18, %v809_v25 }
 0x206   : > { %v1212_v58 = vpop.eup %1211  ;;  %v799_v31 = vld [vmem:[#allocation2] sm:$0xff] }
 0x207   : > { %v745_v59 = vadd.f32 1.0, %v1212_v58  ;;  %v1214_v14 = vpop.eup %1213  ;;  %v803_v63 = vcombine.high %v799_v31, %v799_v31  ;;  %v866_v42 = vrot.slane %v852_v13, %v809_v25  ;;  %v810_v27 = vrot.slane %v799_v31, %v809_v25  ;;  %v1829_v13 = vld [vmem:[#allocation34_spill] sm:$0xff] }
 0x208   : > { %v746_v37 = vadd.f32 1.0, %v1214_v14  ;;  %v867_v32 = vcombine.high %v859_v19, %v859_v19  ;;  %v875_v62 = vrot.slane %v859_v19, %v809_v25  ;;  %v1823_v14 = vld [vmem:[#allocation5_spill] sm:$0xff]  ;;  %v1830_v19 = vld [vmem:[#allocation6_spill] sm:$0xff] }
 0x209   : > { %1215 = vrcp.f32 %v745_v59  ;;  %v817_v1 = vrot.slane %v803_v63, %v809_v25  ;;  %v868_v43 = vcombine.high %v866_v42, %v866_v42  ;;  %v818_v50 = vcombine.high %v810_v27, %v810_v27 }
 0x20a   : > { %1217 = vrcp.f32 %v746_v37  ;;  %v889_v11 = vrot.slane %v867_v32, %v809_v25  ;;  %v882_v52 = vrot.slane %v866_v42, %v809_v25  ;;  %v826_v21 = vrot.slane %v810_v27, %v809_v25  ;;  %v1831_v27 = vld [vmem:[#allocation8_spill] sm:$0xff]  ;;  %v1832_v32 = vld [vmem:[#allocation10_spill] sm:$0xff] }
 0x20b   : > { %v819_v2 = vcombine.high %v817_v1, %v817_v1  ;;  %v896_v44 = vrot.slane %v868_v43, %v809_v25  ;;  %v840_v6 = vrot.slane %v818_v50, %v809_v25  ;;  %v897_v12 = vcombine.high %v875_v62, %v875_v62  ;;  %v1833_v50 = vld [vmem:[#allocation12_spill] sm:$0xff] }
 0x20c   : > { %v833_v40 = vrot.slane %v817_v1, %v809_v25  ;;  %v899_v60 = vcombine.high %v889_v11, %v889_v11  ;;  %v936_v0 = vrot.slane %v875_v62, %v903_v54  ;;  %v898_v36 = vcombine.high %v882_v52, %v882_v52 }
 0x20d   : > { %v847_v41 = vrot.slane %v819_v2, %v809_v25  ;;  %v900_v22 = vcombine.high %v896_v44, %v896_v44  ;;  %v940_v8 = vrot.slane %v889_v11, %v903_v54  ;;  %v848_v10 = vcombine.high %v826_v21, %v826_v21  ;;  %v1828_v25 = vld [vmem:[#allocation32_spill] sm:$0xff]  ;;  %v1834_v2 = vld [vmem:[#allocation14_spill] sm:$0xff] }
 0x20e   : > { %v850_v45 = vcombine.high %v840_v6, %v840_v6  ;;  %v944_v51 = vrot.slane %v897_v12, %v903_v54  ;;  %v849_v9 = vcombine.high %v833_v40, %v833_v40  ;;  %v904_v16 = vrot.slane %v826_v21, %v903_v54  ;;  %v1836_v21 = vld [vmem:[#allocation18_spill] sm:$0xff]  ;;  %v1837_v12 = vld [vmem:[#allocation23_spill] sm:$0xff] }
 0x20f   : > { %v851_v15 = vcombine.high %v847_v41, %v847_v41  ;;  %v948_v17 = vrot.slane %v899_v60, %v903_v54  ;;  %v952_v49 = vrot.slane %v882_v52, %v903_v54  ;;  %v997_v61 = vmul.f32 %v936_v0, %v1819_v23  ;;  %v1835_v52 = vld [vmem:[#allocation16_spill] sm:$0xff] }
 0x210   : > { %v1634_v28 = vmul.f32 %v936_v0, %v1820_v24  ;;  %v956_v29 = vrot.slane %v896_v44, %v903_v54  ;;  %v960_v35 = vrot.slane %v898_v36, %v903_v54  ;;  %v908_v7 = vrot.slane %v840_v6, %v903_v54  ;;  %v1839_v0 = vld [vmem:[#allocation27_spill] sm:$0xff]  ;;  %v1843_v23 = vld [vmem:[#allocation36_spill] sm:$0xff] }
 0x211   : > { %v964_v4 = vrot.slane %v900_v22, %v903_v54  ;;  %v912_v3 = vrot.slane %v848_v10, %v903_v54  ;;  %v916_v38 = vrot.slane %v850_v45, %v903_v54  ;;  %v920_v39 = vrot.slane %v833_v40, %v903_v54  ;;  %v1840_v22 = vld [vmem:[#allocation29_spill] sm:$0xff]  ;;  %v1841_v45 = vld [vmem:[#allocation31_spill] sm:$0xff] }
 0x212   : > { %v924_v47 = vrot.slane %v847_v41, %v903_v54  ;;  %v928_v56 = vrot.slane %v849_v9, %v903_v54  ;;  %v981_v57 = vmul.f32 %v904_v16, %v1821_v53  ;;  %v999_v58 = vmul.f32 %v940_v8, %v1822_v46  ;;  %v1838_v41 = vld [vmem:[#allocation25_spill] sm:$0xff] }
 0x213   : > { %v932_v59 = vrot.slane %v851_v15, %v903_v54  ;;  %v982_v37 = vmul.f32 %v904_v16, %v1823_v14  ;;  %v1003_v34 = vmul.f32 %v948_v17, %v1825_v5  ;;  %v1005_v33 = vmul.f32 %v952_v49, %v1826_v30  ;;  %v1842_v15 = vld [vmem:[#allocation33_spill] sm:$0xff] }
 0x214   : > { %v1007_v18 = vmul.f32 %v956_v29, %v1827_v20  ;;  %v1009_v31 = vmul.f32 %v960_v35, %v1828_v25  ;;  %v1011_v63 = vmul.f32 %v964_v4, %v1829_v13  ;;  %v983_v42 = vmul.f32 %v908_v7, %v1830_v19  ;;  %v1845_v46 = vld [vmem:[#allocation9_spill] sm:$0xff] }
 0x215   : > { %v985_v1 = vmul.f32 %v912_v3, %v1831_v27  ;;  %v987_v43 = vmul.f32 %v916_v38, %v1832_v32  ;;  %v989_v62 = vmul.f32 %v920_v39, %v1833_v50  ;;  %v991_v11 = vmul.f32 %v924_v47, %v1834_v2  ;;  %v1849_v5 = vld [vmem:[#allocation17_spill] sm:$0xff] }
 0x216   : > { %v1216_v26 = vpop.eup %1215  ;;  %v993_v44 = vmul.f32 %v928_v56, %v1835_v52  ;;  %v995_v6 = vmul.f32 %v932_v59, %v1836_v21  ;;  %v1000_v40 = vmul.f32 %v940_v8, %v1837_v12  ;;  %v1002_v60 = vmul.f32 %v944_v51, %v1838_v41 }
 0x217   : > { %759 = vrot.lane.b32.xlu0 %v1216_v26, %s1228_s7  ;;  %v1218_v55 = vpop.eup %1217  ;;  %v1824_v26 = vld [vmem:[#allocation24_spill] sm:$0xff]  ;;  %v1004_v36 = vmul.f32 %v948_v17, %v1839_v0  ;;  %v1006_v10 = vmul.f32 %v952_v49, %v1840_v22  ;;  %v1008_v9 = vmul.f32 %v956_v29, %v1841_v45  ;;  %v1010_v16 = vmul.f32 %v960_v35, %v1842_v15  ;;  %v1847_v17 = vld [vmem:[#allocation13_spill] sm:$0xff]  ;;  %v1848_v29 = vld [vmem:[#allocation15_spill] sm:$0xff] }
 0x218   : > { %v1012_v24 = vmul.f32 %v964_v4, %v1843_v23  ;;  %v986_v14 = vmul.f32 %v912_v3, %v1845_v46  ;;  %v990_v49 = vmul.f32 %v920_v39, %v1847_v17  ;;  %v992_v35 = vmul.f32 %v924_v47, %v1848_v29 }
 0x219   : > { %v994_v4 = vmul.f32 %v928_v56, %v1849_v5 }
 0x21b   : > { %761 = vrot.lane.b32.xlu0 %v1218_v55, %s1228_s7  ;;  %v1001_v55 = vmul.f32 %v944_v51, %v1824_v26  ;;  %v1846_v26 = vld [vmem:[#allocation11_spill] sm:$0xff] }
 0x21c   : > { %v988_v8 = vmul.f32 %v916_v38, %v1846_v26 }
 0x289   : > { %v760_v48 = vpop.permute.xlu0 %759 }
 0x28a   : > { %765 = vst.msk [vmem:[#allocation3] sm:$0xff] %vm225_vm1, %v760_v48  ;;  %v1844_v48 = vld [vmem:[#allocation7_spill] sm:$0xff] }
 0x28b   : > { %v984_v53 = vmul.f32 %v908_v7, %v1844_v48  ;;  %v1850_v7 = vld [vmem:[#allocation19_spill] sm:$0xff] }
 0x28c   : > { %v996_v3 = vmul.f32 %v932_v59, %v1850_v7 }
 0x28d   : > { %v762_v54 = vpop.permute.xlu0 %761 }
 0x28e   : > { %766 = vst.msk [vmem:[#allocation3 + $0x8] sm:$0xff] %vm225_vm1, %v762_v54 }
 0x291   : > { %v1013_v51 = vld [vmem:[#allocation3] sm:$0xff] }
 0x292   : > { %v1015_v38 = vmul.f32 %v1013_v51, %v981_v57  ;;  %v1017_v30 = vmul.f32 %v1013_v51, %v983_v42  ;;  %v1019_v20 = vmul.f32 %v1013_v51, %v985_v1  ;;  %v1021_v25 = vmul.f32 %v1013_v51, %v987_v43 }
 0x293   : > { %v1023_v13 = vmul.f32 %v1013_v51, %v989_v62  ;;  %v1025_v19 = vmul.f32 %v1013_v51, %v991_v11  ;;  %v1027_v27 = vmul.f32 %v1013_v51, %v993_v44  ;;  %v1029_v39 = vmul.f32 %v1013_v51, %v995_v6 }
 0x294   : > { %v1031_v47 = vmul.f32 %v1013_v51, %v997_v61  ;;  %v1033_v32 = vmul.f32 %v1013_v51, %v999_v58  ;;  %v1035_v56 = vmul.f32 %v1013_v51, %v1001_v55  ;;  %v1037_v50 = vmul.f32 %v1013_v51, %v1003_v34  ;;  %1048 = vst.msk [vmem:[%s1669_s10] sm:$0xff] %vm225_vm1, %v1015_v38 }
 0x295   : > { %1050 = vst.msk [vmem:[%s1669_s10 + $0x10] sm:$0xff] %vm225_vm1, %v1017_v30  ;;  %1052 = vst.msk [vmem:[%s1669_s10 + $0x20] sm:$0xff] %vm225_vm1, %v1019_v20  ;;  %v1039_v57 = vmul.f32 %v1013_v51, %v1005_v33  ;;  %v1041_v59 = vmul.f32 %v1013_v51, %v1007_v18  ;;  %v1043_v42 = vmul.f32 %v1013_v51, %v1009_v31  ;;  %v1014_v58 = vld [vmem:[#allocation3 + $0x8] sm:$0xff] }
 0x296   : > { %1054 = vst.msk [vmem:[%s1669_s10 + $0x30] sm:$0xff] %vm225_vm1, %v1021_v25  ;;  %v1045_v61 = vmul.f32 %v1013_v51, %v1011_v63  ;;  %1056 = vst.msk [vmem:[%s1669_s10 + $0x40] sm:$0xff] %vm225_vm1, %v1023_v13  ;;  %v1016_v55 = vmul.f32 %v1014_v58, %v982_v37  ;;  %v1018_v34 = vmul.f32 %v1014_v58, %v984_v53 }
 0x297   : > { %1058 = vst.msk [vmem:[%s1669_s10 + $0x50] sm:$0xff] %vm225_vm1, %v1025_v19  ;;  %1060 = vst.msk [vmem:[%s1669_s10 + $0x60] sm:$0xff] %vm225_vm1, %v1027_v27  ;;  %v1020_v33 = vmul.f32 %v1014_v58, %v986_v14  ;;  %v1022_v18 = vmul.f32 %v1014_v58, %v988_v8  ;;  %v1024_v31 = vmul.f32 %v1014_v58, %v990_v49 }
 0x298   : > { %1062 = vst.msk [vmem:[%s1669_s10 + $0x70] sm:$0xff] %vm225_vm1, %v1029_v39  ;;  %1064 = vst.msk [vmem:[%s1669_s10 + $0x80] sm:$0xff] %vm225_vm1, %v1031_v47  ;;  %v1026_v63 = vmul.f32 %v1014_v58, %v992_v35  ;;  %v1028_v37 = vmul.f32 %v1014_v58, %v994_v4  ;;  %v1030_v1 = vmul.f32 %v1014_v58, %v996_v3 }
 0x299   : > { %1066 = vst.msk [vmem:[%s1669_s10 + $0x90] sm:$0xff] %vm225_vm1, %v1033_v32  ;;  %1068 = vst.msk [vmem:[%s1669_s10 + $0xa0] sm:$0xff] %vm225_vm1, %v1035_v56  ;;  %v1032_v43 = vmul.f32 %v1014_v58, %v1634_v28  ;;  %v1034_v62 = vmul.f32 %v1014_v58, %v1000_v40  ;;  %v1036_v2 = vmul.f32 %v1014_v58, %v1002_v60 }
 0x29a   : > { %1070 = vst.msk [vmem:[%s1669_s10 + $0xb0] sm:$0xff] %vm225_vm1, %v1037_v50  ;;  %1072 = vst.msk [vmem:[%s1669_s10 + $0xc0] sm:$0xff] %vm225_vm1, %v1039_v57  ;;  %v1038_v11 = vmul.f32 %v1014_v58, %v1004_v36  ;;  %v1040_v28 = vmul.f32 %v1014_v58, %v1006_v10  ;;  %v1042_v54 = vmul.f32 %v1014_v58, %v1008_v9 }
 0x29b   : > { %1074 = vst.msk [vmem:[%s1669_s10 + $0xd0] sm:$0xff] %vm225_vm1, %v1041_v59  ;;  %1076 = vst.msk [vmem:[%s1669_s10 + $0xe0] sm:$0xff] %vm225_vm1, %v1043_v42  ;;  %v1044_v52 = vmul.f32 %v1014_v58, %v1010_v16  ;;  %v1046_v44 = vmul.f32 %v1014_v58, %v1012_v24 }
 0x29c   : > { %1078 = vst.msk [vmem:[%s1669_s10 + $0xf0] sm:$0xff] %vm225_vm1, %v1045_v61  ;;  %1049 = vst.msk [vmem:[%s1669_s10 + $0x8] sm:$0xff] %vm225_vm1, %v1016_v55 }
 0x29d   : > { %1051 = vst.msk [vmem:[%s1669_s10 + $0x18] sm:$0xff] %vm225_vm1, %v1018_v34  ;;  %1053 = vst.msk [vmem:[%s1669_s10 + $0x28] sm:$0xff] %vm225_vm1, %v1020_v33 }
 0x29e   : > { %1055 = vst.msk [vmem:[%s1669_s10 + $0x38] sm:$0xff] %vm225_vm1, %v1022_v18  ;;  %1057 = vst.msk [vmem:[%s1669_s10 + $0x48] sm:$0xff] %vm225_vm1, %v1024_v31 }
 0x29f   : > { %1059 = vst.msk [vmem:[%s1669_s10 + $0x58] sm:$0xff] %vm225_vm1, %v1026_v63  ;;  %1061 = vst.msk [vmem:[%s1669_s10 + $0x68] sm:$0xff] %vm225_vm1, %v1028_v37 }
 0x2a0   : > { %1063 = vst.msk [vmem:[%s1669_s10 + $0x78] sm:$0xff] %vm225_vm1, %v1030_v1  ;;  %1065 = vst.msk [vmem:[%s1669_s10 + $0x88] sm:$0xff] %vm225_vm1, %v1032_v43 }
 0x2a1   : > { %1067 = vst.msk [vmem:[%s1669_s10 + $0x98] sm:$0xff] %vm225_vm1, %v1034_v62  ;;  %1069 = vst.msk [vmem:[%s1669_s10 + $0xa8] sm:$0xff] %vm225_vm1, %v1036_v2 }
 0x2a2   : > { %1071 = vst.msk [vmem:[%s1669_s10 + $0xb8] sm:$0xff] %vm225_vm1, %v1038_v11  ;;  %1073 = vst.msk [vmem:[%s1669_s10 + $0xc8] sm:$0xff] %vm225_vm1, %v1040_v28 }
 0x2a3   : > { %1075 = vst.msk [vmem:[%s1669_s10 + $0xd8] sm:$0xff] %vm225_vm1, %v1042_v54  ;;  %1077 = vst.msk [vmem:[%s1669_s10 + $0xe8] sm:$0xff] %vm225_vm1, %v1044_v52 }
 0x2a4   : > { %1079 = vst.msk [vmem:[%s1669_s10 + $0xf8] sm:$0xff] %vm225_vm1, %v1046_v44 }
 0x2a5 PF: > { %s15_s18 = sadd.s32 1, %s1225_s18  }
 0x2a6   : > { %p12_p4 = scmp.ge.s32.totalorder %s15_s18, 4  }
 0x2a8   :  { %14 = sbr.rel (!%p12_p4) target bundleno = 1 (0x1), region = 72 }

</bundles_post_ra>
